<compile_context>
chip_gen: v7x
topology: tpu7x:2x2x1
jax: 0.10.0
libtpu: 0.0.40
codegen_flags: <defaults>
</compile_context>

<pallas_src>
import numpy as np
import jax
import jax.numpy as jnp
from jax.experimental import pallas as pl
from jax.experimental.pallas import tpu as pltpu

_CLS_PAD = 128   # lane-dense width for the tiny 2-wide classifier head
_BT_CAP = 512    # batch-tile cap (keeps w1 re-streams on the MXU roofline)
_FT_CAP = 512    # feature-tile cap


def _round_up(x, m):
    return ((x + m - 1) // m) * m


def _vmem_limits():
    """Generation-aware VMEM sizing (64 MiB physical on v7x, 128 MiB on v5e/v6e)."""
    cap = 64 << 20
    try:
        info = pltpu.get_tpu_info()
        queried = int(getattr(info, "vmem_capacity_bytes", 0) or 0)
        if queried >= (48 << 20):
            cap = queried
    except Exception:
        pass
    limit = min(3 * cap // 4, cap - (16 << 20))   # 48 MiB on v7x, 96 MiB on v5e/v6e
    budget = limit - (8 << 20)                    # headroom for compiler scratch
    return budget, limit


def _footprint_bytes(bt, ft, input_size, cbytes, f_bytes):
    """Per-step VMEM footprint: double-buffered in/out tiles (no extra scratch)."""
    per_buf = (bt * input_size * cbytes        # x tile
               + input_size * ft * cbytes      # w1 tile
               + ft * 4                        # b1 tile
               + ft * _CLS_PAD * cbytes        # w2 tile
               + _CLS_PAD * 4                  # b2
               + bt * ft * f_bytes             # f tile
               + bt * _CLS_PAD * 4)            # cls tile (also the accumulator)
    return 2 * per_buf


def _choose_feature_tile(input_size, num_features, cbytes, f_bytes, vmem_budget):
    ft = num_features if num_features <= _FT_CAP else _FT_CAP
    while (_footprint_bytes(_BT_CAP, ft, input_size, cbytes, f_bytes) > vmem_budget
           and ft > 128 and ft % 256 == 0):
        ft //= 2
    return ft


def _choose_batch_tile(B, ft, input_size, cbytes, f_bytes, vmem_budget, align):
    bt = min(_BT_CAP, _round_up(B, align))
    # Keep >= 2 batch tiles for the v7x megacore when B is large enough for the
    # split to amortize the ~0.35 us per-grid-step overhead.
    if B >= 256 and _round_up(B, align) <= _BT_CAP:
        bt = _round_up(-(-B // 2), align)
    while (_footprint_bytes(bt, ft, input_size, cbytes, f_bytes) > vmem_budget
           and bt > align):
        bt = max(align, _round_up(bt // 2, align))
    if _footprint_bytes(bt, ft, input_size, cbytes, f_bytes) > vmem_budget:
        # TODO(synk): K (input_size) tiling needed for extremely wide inputs.
        raise ValueError("input_size too large for VMEM without K tiling")
    return bt


def _discriminator_kernel(x_ref, w1_ref, b1_ref, w2_ref, b2_ref, cls_ref, f_ref):
    # Grid: (batch tiles [parallel], feature tiles [arbitrary / reduction]).
    j = pl.program_id(1)

    @pl.when(j == 0)
    def _():
        cls_ref[...] = jnp.zeros_like(cls_ref)     # accumulator lives in cls_ref

    # f tile: (bt, ft) = x(bt, K) @ w1(K, ft) + b1 ; MXU with f32 accumulation.
    f = jnp.dot(x_ref[...], w1_ref[...],
                preferred_element_type=jnp.float32) + b1_ref[...]
    f_ref[...] = f.astype(f_ref.dtype)

    # Partial classifier logits for this feature tile, reduced over j in-place.
    cls_ref[...] += jnp.dot(f.astype(w2_ref.dtype), w2_ref[...],
                            preferred_element_type=jnp.float32)

    @pl.when(j == pl.num_programs(1) - 1)
    def _():
        # Bias add + sigmoid stay in f32 (no bf16 VPU/EUP on v5e).
        cls_ref[...] = jax.nn.sigmoid(cls_ref[...] + b2_ref[...])


def make_discriminator(w1, b1, w2, b2, *,
                       compute_dtype=jnp.float32, f_dtype=jnp.float32):
    """Prepare (once) the padded/transposed weights and return a jitted forward.

    w1: [num_features, input_size], b1: [num_features]   (PyTorch Linear layout)
    w2: [2, num_features],          b2: [2]
    compute_dtype: dtype fed to the MXU (f32 or bf16); accumulation is f32.
    f_dtype: dtype of the emitted feature tensor f (f32 or bf16).
    forward(x: [B, input_size]) -> (cls [B, 2] f32, f [B, num_features] f_dtype)."""
    num_features, input_size = w1.shape
    n_cls = w2.shape[0]
    cbytes = np.dtype(compute_dtype).itemsize
    f_bytes = np.dtype(f_dtype).itemsize
    align = 16 if min(cbytes, f_bytes) < 4 else 8

    vmem_budget, vmem_limit = _vmem_limits()
    ft = _choose_feature_tile(input_size, num_features, cbytes, f_bytes, vmem_budget)
    nf_pad = _round_up(num_features, ft)

    # --- one-time weight relayout (NOT on the per-call path) ------------------
    w1_t = jnp.zeros((input_size, nf_pad), compute_dtype).at[:, :num_features].set(
        jnp.asarray(w1, compute_dtype).T)
    b1_p = jnp.zeros((1, nf_pad), jnp.float32).at[0, :num_features].set(
        jnp.asarray(b1, jnp.float32))
    w2_t = jnp.zeros((nf_pad, _CLS_PAD), compute_dtype).at[:num_features, :n_cls].set(
        jnp.asarray(w2, compute_dtype).T)
    b2_p = jnp.zeros((1, _CLS_PAD), jnp.float32).at[0, :n_cls].set(
        jnp.asarray(b2, jnp.float32))

    def forward(x):
        B = x.shape[0]
        bt = _choose_batch_tile(B, ft, input_size, cbytes, f_bytes,
                                vmem_budget, align)
        B_pad = _round_up(B, bt)
        x_p = jnp.zeros((B_pad, input_size), compute_dtype).at[:B].set(
            x.astype(compute_dtype))

        grid = (B_pad // bt, nf_pad // ft)

        cost = pl.CostEstimate(
            flops=2 * B_pad * input_size * nf_pad + 2 * B_pad * nf_pad * _CLS_PAD,
            transcendentals=B_pad * _CLS_PAD,
            bytes_accessed=(x_p.size * cbytes
                            + grid[0] * (w1_t.size * cbytes + b1_p.size * 4
                                         + w2_t.size * cbytes)
                            + b2_p.size * 4
                            + B_pad * nf_pad * f_bytes
                            + B_pad * _CLS_PAD * 4),
        )

        cls_pad, f_pad = pl.pallas_call(
            _discriminator_kernel,
            out_shape=(
                jax.ShapeDtypeStruct((B_pad, _CLS_PAD), jnp.float32),
                jax.ShapeDtypeStruct((B_pad, nf_pad), f_dtype),
            ),
            grid_spec=pltpu.PrefetchScalarGridSpec(
                num_scalar_prefetch=0,
                grid=grid,
                in_specs=[
                    pl.BlockSpec((bt, input_size), lambda i, j: (i, 0)),   # x
                    pl.BlockSpec((input_size, ft), lambda i, j: (0, j)),   # w1^T tile
                    pl.BlockSpec((1, ft),          lambda i, j: (0, j)),   # b1 tile
                    pl.BlockSpec((ft, _CLS_PAD),   lambda i, j: (j, 0)),   # w2^T tile
                    pl.BlockSpec((1, _CLS_PAD),    lambda i, j: (0, 0)),   # b2
                ],
                out_specs=[
                    pl.BlockSpec((bt, _CLS_PAD), lambda i, j: (i, 0)),     # cls (acc over j)
                    pl.BlockSpec((bt, ft),       lambda i, j: (i, j)),     # f
                ],
            ),
            compiler_params=pltpu.CompilerParams(
                dimension_semantics=("parallel", "arbitrary"),
                vmem_limit_bytes=vmem_limit,
            ),
            cost_estimate=cost,
        )(x_p, w1_t, b1_p, w2_t, b2_p)

        return cls_pad[:B, :n_cls], f_pad[:B, :num_features]

    # jit fuses the x padding / output slicing; padded weights ride along via
    # the closure (already relaid-out) so no per-call transpose/pad remains.
    return jax.jit(forward)


def discriminator_forward(x, w1, b1, w2, b2, **kwargs):
    """One-off convenience wrapper (re-prepares weights each call)."""
    return make_discriminator(w1, b1, w2, b2, **kwargs)(x)


if __name__ == "__main__":
    # Small, deliberately tile-misaligned shapes: batch=13, input=64, features=96.
    B, input_size, num_features = 13, 64, 96

    key = jax.random.PRNGKey(0)
    kx, kw1, kb1, kw2, kb2 = jax.random.split(key, 5)

    x = jax.random.normal(kx, (B, input_size), dtype=jnp.float32)
    # PyTorch nn.Linear parameter shapes: weight (out, in), bias (out,)
    w1 = jax.random.normal(kw1, (num_features, input_size), dtype=jnp.float32) * 0.1
    b1 = jax.random.normal(kb1, (num_features,), dtype=jnp.float32) * 0.1
    w2 = jax.random.normal(kw2, (2, num_features), dtype=jnp.float32) * 0.1
    b2 = jax.random.normal(kb2, (2,), dtype=jnp.float32) * 0.1

    # Plain-JAX reference (same math as the PyTorch module).
    f_ref = x @ w1.T + b1
    cls_ref = jax.nn.sigmoid(f_ref @ w2.T + b2)

    # f32 path: must match the reference tightly.
    disc_f32 = make_discriminator(w1, b1, w2, b2, compute_dtype=jnp.float32)
    cls_out, f_out = disc_f32(x)
    jax.block_until_ready((cls_out, f_out))
    assert cls_out.shape == (B, 2) and f_out.shape == (B, num_features)
    assert jnp.allclose(f_out, f_ref, atol=1e-5, rtol=1e-5)
    assert jnp.allclose(cls_out, cls_ref, atol=1e-5, rtol=1e-5)

    # bf16 MXU path with bf16 f output (f32 accumulation + f32 elementwise).
    disc_bf16 = make_discriminator(w1, b1, w2, b2,
                                   compute_dtype=jnp.bfloat16,
                                   f_dtype=jnp.bfloat16)
    cls_bf, f_bf = disc_bf16(x)
    jax.block_until_ready((cls_bf, f_bf))
    assert f_bf.dtype == jnp.bfloat16
    assert jnp.allclose(f_bf.astype(jnp.float32), f_ref, atol=5e-2, rtol=5e-2)
    assert jnp.allclose(cls_bf, cls_ref, atol=5e-2, rtol=5e-2)

    print("KERNEL_OK")
</pallas_src>

<mosaic_0001>
module attributes {stable_mosaic.version = 11 : i64} {
  func.func @_discriminator_kernel(%arg0: i32, %arg1: i32, %arg2: memref<16x64xf32, #tpu.memory_space<vmem>>, %arg3: memref<64x96xf32, #tpu.memory_space<vmem>>, %arg4: memref<1x96xf32, #tpu.memory_space<vmem>>, %arg5: memref<96x128xf32, #tpu.memory_space<vmem>>, %arg6: memref<1x128xf32, #tpu.memory_space<vmem>>, %arg7: memref<16x128xf32, #tpu.memory_space<vmem>>, %arg8: memref<16x96xf32, #tpu.memory_space<vmem>>) attributes {dimension_semantics = [#tpu.dimension_semantics<parallel>, #tpu.dimension_semantics<arbitrary>], iteration_bounds = array<i64: 1, 1>, scalar_prefetch = 0 : i64, scratch_operands = 0 : i64, tpu.core_type = #tpu.core_type<tc>, window_params = [{transform_indices = @transform_0, window_bounds = array<i64: 16, 64>}, {transform_indices = @transform_1, window_bounds = array<i64: 64, 96>}, {transform_indices = @transform_2, window_bounds = array<i64: 1, 96>}, {transform_indices = @transform_3, window_bounds = array<i64: 96, 128>}, {pipeline_mode = #tpu.pipeline_mode<synchronous>, transform_indices = @transform_4, window_bounds = array<i64: 1, 128>}, {transform_indices = @transform_5, window_bounds = array<i64: 16, 128>}, {transform_indices = @transform_6, window_bounds = array<i64: 16, 96>}]} {
    %c0_i32 = arith.constant 0 : i32
    %0 = arith.cmpi eq, %arg1, %c0_i32 : i32
    %1 = arith.extui %0 : i1 to i32
    %c0_i32_0 = arith.constant 0 : i32
    %2 = arith.cmpi ne, %1, %c0_i32_0 : i32
    scf.if %2 {
      %cst_17 = arith.constant 0.000000e+00 : f32
      %18 = vector.broadcast %cst_17 : f32 to vector<16x128xf32>
      %c0_18 = arith.constant 0 : index
      %c0_19 = arith.constant 0 : index
      %19 = vector.load %arg7[%c0_18, %c0_19] : memref<16x128xf32, #tpu.memory_space<vmem>>, vector<16x128xf32>
      tpu.vector_store %arg7[%c0_18, %c0_19], %18 {strides = array<i32>} : memref<16x128xf32, #tpu.memory_space<vmem>>, vector<16x128xf32>,
    } else {
    }
    %c0 = arith.constant 0 : index
    %c0_1 = arith.constant 0 : index
    %3 = vector.load %arg2[%c0, %c0_1] : memref<16x64xf32, #tpu.memory_space<vmem>>, vector<16x64xf32>
    %c0_2 = arith.constant 0 : index
    %c0_3 = arith.constant 0 : index
    %4 = vector.load %arg3[%c0_2, %c0_3] : memref<64x96xf32, #tpu.memory_space<vmem>>, vector<64x96xf32>
    %cst = arith.constant dense<0.000000e+00> : vector<16x96xf32>
    %5 = tpu.matmul %3, %4, %cst {dimension_numbers = #tpu.dot_dimension_numbers<[1], [0], [0], [1], [0, 0, 1, 1], [], []>} : vector<16x64xf32>, vector<64x96xf32>, vector<16x96xf32> -> vector<16x96xf32>
    %c0_4 = arith.constant 0 : index
    %c0_5 = arith.constant 0 : index
    %6 = vector.load %arg4[%c0_4, %c0_5] : memref<1x96xf32, #tpu.memory_space<vmem>>, vector<1x96xf32>
    %7 = vector.broadcast %6 : vector<1x96xf32> to vector<16x96xf32>
    %8 = arith.addf %5, %7 : vector<16x96xf32>
    %c0_6 = arith.constant 0 : index
    %c0_7 = arith.constant 0 : index
    %9 = vector.load %arg8[%c0_6, %c0_7] : memref<16x96xf32, #tpu.memory_space<vmem>>, vector<16x96xf32>
    tpu.vector_store %arg8[%c0_6, %c0_7], %8 {strides = array<i32>} : memref<16x96xf32, #tpu.memory_space<vmem>>, vector<16x96xf32>,
    %c0_8 = arith.constant 0 : index
    %c0_9 = arith.constant 0 : index
    %10 = vector.load %arg7[%c0_8, %c0_9] : memref<16x128xf32, #tpu.memory_space<vmem>>, vector<16x128xf32>
    %c0_10 = arith.constant 0 : index
    %c0_11 = arith.constant 0 : index
    %11 = vector.load %arg5[%c0_10, %c0_11] : memref<96x128xf32, #tpu.memory_space<vmem>>, vector<96x128xf32>
    %cst_12 = arith.constant dense<0.000000e+00> : vector<16x128xf32>
    %12 = tpu.matmul %8, %11, %cst_12 {dimension_numbers = #tpu.dot_dimension_numbers<[1], [0], [0], [1], [0, 0, 1, 1], [], []>} : vector<16x96xf32>, vector<96x128xf32>, vector<16x128xf32> -> vector<16x128xf32>
    %13 = arith.addf %10, %12 : vector<16x128xf32>
    %c0_13 = arith.constant 0 : index
    %c0_14 = arith.constant 0 : index
    %14 = vector.load %arg7[%c0_13, %c0_14] : memref<16x128xf32, #tpu.memory_space<vmem>>, vector<16x128xf32>
    tpu.vector_store %arg7[%c0_13, %c0_14], %13 {strides = array<i32>} : memref<16x128xf32, #tpu.memory_space<vmem>>, vector<16x128xf32>,
    %c0_i32_15 = arith.constant 0 : i32
    %15 = arith.cmpi eq, %arg1, %c0_i32_15 : i32
    %16 = arith.extui %15 : i1 to i32
    %c0_i32_16 = arith.constant 0 : i32
    %17 = arith.cmpi ne, %16, %c0_i32_16 : i32
    scf.if %17 {
      %c0_17 = arith.constant 0 : index
      %c0_18 = arith.constant 0 : index
      %18 = vector.load %arg7[%c0_17, %c0_18] : memref<16x128xf32, #tpu.memory_space<vmem>>, vector<16x128xf32>
      %c0_19 = arith.constant 0 : index
      %c0_20 = arith.constant 0 : index
      %19 = vector.load %arg6[%c0_19, %c0_20] : memref<1x128xf32, #tpu.memory_space<vmem>>, vector<1x128xf32>
      %20 = vector.broadcast %19 : vector<1x128xf32> to vector<16x128xf32>
      %21 = arith.addf %18, %20 : vector<16x128xf32>
      %22 = arith.negf %21 : vector<16x128xf32>
      %23 = math.exp %22 : vector<16x128xf32>
      %cst_21 = arith.constant 1.000000e+00 : f32
      %24 = vector.broadcast %cst_21 : f32 to vector<16x128xf32>
      %25 = arith.addf %24, %23 : vector<16x128xf32>
      %26 = arith.divf %24, %25 : vector<16x128xf32>
      %c0_22 = arith.constant 0 : index
      %c0_23 = arith.constant 0 : index
      %27 = vector.load %arg7[%c0_22, %c0_23] : memref<16x128xf32, #tpu.memory_space<vmem>>, vector<16x128xf32>
      tpu.vector_store %arg7[%c0_22, %c0_23], %26 {strides = array<i32>} : memref<16x128xf32, #tpu.memory_space<vmem>>, vector<16x128xf32>,
    } else {
    }
    return
  }
  func.func @transform_0(%arg0: i32, %arg1: i32) -> (i32, i32) {
    %c0_i32 = arith.constant 0 : i32
    %c0_i32_0 = arith.constant 0 : i32
    return %arg0, %c0_i32 : i32, i32
  }
  func.func @transform_1(%arg0: i32, %arg1: i32) -> (i32, i32) {
    %c0_i32 = arith.constant 0 : i32
    %c0_i32_0 = arith.constant 0 : i32
    return %c0_i32, %arg1 : i32, i32
  }
  func.func @transform_2(%arg0: i32, %arg1: i32) -> (i32, i32) {
    %c0_i32 = arith.constant 0 : i32
    %c0_i32_0 = arith.constant 0 : i32
    return %c0_i32, %arg1 : i32, i32
  }
  func.func @transform_3(%arg0: i32, %arg1: i32) -> (i32, i32) {
    %c0_i32 = arith.constant 0 : i32
    %c0_i32_0 = arith.constant 0 : i32
    return %arg1, %c0_i32 : i32, i32
  }
  func.func @transform_4(%arg0: i32, %arg1: i32) -> (i32, i32) {
    %c0_i32 = arith.constant 0 : i32
    %c0_i32_0 = arith.constant 0 : i32
    %c0_i32_1 = arith.constant 0 : i32
    return %c0_i32, %c0_i32_0 : i32, i32
  }
  func.func @transform_5(%arg0: i32, %arg1: i32) -> (i32, i32) {
    %c0_i32 = arith.constant 0 : i32
    %c0_i32_0 = arith.constant 0 : i32
    return %arg0, %c0_i32 : i32, i32
  }
  func.func @transform_6(%arg0: i32, %arg1: i32) -> (i32, i32) {
    %c0_i32 = arith.constant 0 : i32
    return %arg0, %arg1 : i32, i32
  }
}

</mosaic_0001>

<bundles_post_ra>
// kernel: forward.1
= control target key start
LH: loop header
LB: loop body
LE: loop exit
PB: predicated region body
PF: predicated region fallthrough
CT: control target
= control target key end

     0   :  { %12 = vsyncpa [#allocation3], 0  ;;  %s617_s0 = inlined_call_operand.vmem [shape: f32[16,64], index: 0, kind: input, shape index: {}]   ;;  %s618_s1 = inlined_call_operand.hbm [shape: f32[64,96], index: 1, kind: input, shape index: {}]   ;;  %s619_s2 = inlined_call_operand.vmem [shape: f32[1,96], index: 2, kind: input, shape index: {}]   ;;  %s620_s3 = inlined_call_operand.hbm [shape: f32[96,128], index: 3, kind: input, shape index: {}]   ;;  %s621_s4 = inlined_call_operand.vmem [shape: f32[1,128], index: 4, kind: input, shape index: {}]   ;;  %s622_s5 = inlined_call_operand.vmem [shape: f32[16,128], index: 5, kind: output, shape index: {0}]   ;;  %s623_s6 = inlined_call_operand.hbm [shape: f32[16,96], index: 6, kind: output, shape index: {1}]  }
   0x1   :  { %13 = vsyncpa [#allocation6], 0 }
   0x2   :  { %14 = vsyncpa [#allocation4], 0  ;;  %s512_s21 = smov [#allocation2]   ;;  %s440_s25 = scalar_lea.hbm %s618_s1, 1024 }
   0x3   :  { %s22_s22 = sshll.u32 %s512_s21, 4  ;;  %p441_p0 = scmp.ne.s32.totalorder %s618_s1, %s440_s25  ;;  %s23_s22 = int_to_ptr.vmem [resolvable:$true] %s22_s22 }
   0x4   :  { %p444_p1 = scmp.lt.u32.totalorder %s440_s25, %s618_s1 }
   0x6   :  { %p446_p2 = pnand %p444_p1, %p441_p0 }
   0x8   :  { %449 = shalt.err (!%p446_p2)
}
   0x9   :  { %s450_s30 = scalar_lea.vmem %s23_s22, 1024  ;;  %p455_p4 = scmp.lt.s32.totalorder %s23_s22, %s23_s22 }
   0xa   :  { %p451_p3 = scmp.ne.s32.totalorder %s23_s22, %s450_s30  ;;  %p456_p5 = scmp.lt.s32.totalorder %s450_s30, %s450_s30 }
   0xc   :  { %p457_p6 = por %p456_p5, %p455_p4 }
   0xe   :  { %p458_p7 = pnand %p457_p6, %p451_p3 }
  0x10   :  { %461 = shalt.err (!%p458_p7)
}
  0x11   :  { %s513_s7 = smov 128   ;;  %s514_s8 = smov 8  }
  0x12   :  { %28 = dma.hbm_to_vmem [thread:$0]  %s618_s1, 1024, %s23_s22, [#allocation3], %s513_s7, %s513_s7, %s514_s8  }
  0x13   :  { %s515_s11 = smov [#allocation5]   ;;  %s462_s15 = scalar_lea.hbm %s620_s3, 1536 }
  0x14   :  { %s36_s12 = sshll.u32 %s515_s11, 4  ;;  %p463_p8 = scmp.ne.s32.totalorder %s620_s3, %s462_s15  ;;  %s37_s12 = int_to_ptr.vmem [resolvable:$true] %s36_s12 }
  0x15   :  { %p466_p9 = scmp.lt.u32.totalorder %s462_s15, %s620_s3 }
  0x17   :  { %p468_p10 = pnand %p466_p9, %p463_p8 }
  0x19   :  { %471 = shalt.err (!%p468_p10)
}
  0x1a   :  { %s472_s20 = scalar_lea.vmem %s37_s12, 1536  ;;  %p477_p12 = scmp.lt.s32.totalorder %s37_s12, %s37_s12 }
  0x1b   :  { %p473_p11 = scmp.ne.s32.totalorder %s37_s12, %s472_s20  ;;  %p478_p13 = scmp.lt.s32.totalorder %s472_s20, %s472_s20 }
  0x1d   :  { %p479_p0 = por %p478_p13, %p477_p12 }
  0x1f   :  { %p480_p1 = pnand %p479_p0, %p473_p11 }
  0x21   :  { %483 = shalt.err (!%p480_p1)
}
  0x22   :  { %42 = dma.hbm_to_vmem [thread:$0]  %s620_s3, 1536, %s37_s12, [#allocation6], %s513_s7, %s513_s7, %s514_s8  }
  0x23   :  { %506 = dma.done.wait [#allocation3], 1024  }
  0x24   :  { %507 = vsyncadd [#allocation3], 4294966272 }
  0x25   :  { %508 = dma.done.wait [#allocation6], 1536  }
  0x26   :  { %509 = vsyncadd [#allocation6], 4294965760  ;;  %v59_v0 = vld [vmem:[#allocation2] sm:$0xff]  ;;  %v60_v1 = vld [vmem:[#allocation2 + $0x8] sm:$0xff]  ;;  %vm74_vm0 = vcmask 523264   ;;  %vm156_vm1 = vcmask 785408  }
  0x27   :  { %v61_v2 = vld [vmem:[#allocation2 + $0x10] sm:$0xff]  ;;  %v386_v3 = vpack.c.bf16 %v60_v1, %v59_v0  ;;  %v62_v4 = vld [vmem:[#allocation2 + $0x18] sm:$0xff]  ;;  %v63_v6 = vld [vmem:[#allocation2 + $0x20] sm:$0xff] }
  0x28   :  { %v390_v5 = vpack.c.bf16 %v62_v4, %v61_v2  ;;  %v64_v7 = vld [vmem:[#allocation2 + $0x28] sm:$0xff]  ;;  %v57_v8 = vld [vmem:[%s617_s0] sm:$0xff]  ;;  %v163_v12 = vld [vmem:[#allocation5 + $0x10] sm:$0xff] }
  0x29   :  { %387 = vmatprep.subr.bf16.mxu0 %v386_v3  ;;  %356 = vmatprep.mubr.msk.f32.mxu0 %vm74_vm0, %v57_v8  ;;  %v161_v9 = vld [vmem:[#allocation5] sm:$0xff]  ;;  %v162_v10 = vld [vmem:[#allocation5 + $0x8] sm:$0xff]  ;;  %v164_v13 = vld [vmem:[#allocation5 + $0x18] sm:$0xff]  ;;  %v394_v14 = vpack.c.bf16 %v64_v7, %v63_v6 }
  0x2a   :  { %389 = vmatpush3.bf16.msra.mxu0 %v386_v3  ;;  %v402_v11 = vpack.c.bf16 %v162_v10, %v161_v9  ;;  %v406_v15 = vpack.c.bf16 %v164_v13, %v163_v12  ;;  %v165_v16 = vld [vmem:[#allocation5 + $0x20] sm:$0xff]  ;;  %v166_v17 = vld [vmem:[#allocation5 + $0x28] sm:$0xff]  ;;  %v65_v18 = vld [vmem:[#allocation2 + $0x30] sm:$0xff] }
  0x2b   :  { %391 = vmatprep.subr.bf16.mxu0 %v390_v5  ;;  %v66_v19 = vld [vmem:[#allocation2 + $0x38] sm:$0xff]  ;;  %v410_v20 = vpack.c.bf16 %v166_v17, %v165_v16  ;;  %v167_v22 = vld [vmem:[#allocation5 + $0x30] sm:$0xff]  ;;  %v169_v25 = vld [vmem:[#allocation5 + $0x40] sm:$0xff] }
  0x2c   :  { %403 = vmatprep.subr.bf16.mxu1 %v402_v11  ;;  %v398_v21 = vpack.c.bf16 %v66_v19, %v65_v18  ;;  %v168_v23 = vld [vmem:[#allocation5 + $0x38] sm:$0xff]  ;;  %v170_v26 = vld [vmem:[#allocation5 + $0x48] sm:$0xff]  ;;  %v171_v29 = vld [vmem:[#allocation5 + $0x50] sm:$0xff] }
  0x2d   :  { %405 = vmatpush3.bf16.msra.mxu1 %v402_v11  ;;  %v414_v24 = vpack.c.bf16 %v168_v23, %v167_v22  ;;  %v58_v27 = vld [vmem:[%s617_s0 + $0x8] sm:$0xff]  ;;  %v418_v28 = vpack.c.bf16 %v170_v26, %v169_v25  ;;  %v172_v30 = vld [vmem:[#allocation5 + $0x58] sm:$0xff]  ;;  %v308_v32 = vld [vmem:[%s619_s2] ss:$0 sm:$0xff]  ;;  %s516_s0 = smov [#allocation7]  }
  0x2e   :  { %393 = vmatpush3.bf16.msra.mxu0 %v390_v5  ;;  %407 = vmatprep.subr.bf16.mxu1 %v406_v15  ;;  %v422_v31 = vpack.c.bf16 %v172_v30, %v171_v29  ;;  %s293_s27 = sshll.u32 %s516_s0, 4  ;;  %s294_s27 = int_to_ptr.vmem [resolvable:$true] %s293_s27 }
  0x2f   :  { %395 = vmatprep.subr.bf16.mxu0 %v394_v14  ;;  %s484_s28 = scalar_lea.vmem %s294_s27, 256  ;;  %p489_p3 = scmp.lt.s32.totalorder %s294_s27, %s294_s27 }
  0x30   :  { %p485_p2 = scmp.ne.s32.totalorder %s294_s27, %s484_s28  ;;  %p490_p4 = scmp.lt.s32.totalorder %s484_s28, %s484_s28 }
  0x31   :  { %409 = vmatpush3.bf16.msra.mxu1 %v406_v15 }
  0x32   :  { %397 = vmatpush3.bf16.msra.mxu0 %v394_v14  ;;  %411 = vmatprep.subr.bf16.mxu1 %v410_v20  ;;  %p491_p5 = por %p490_p4, %p489_p3 }
  0x33   :  { %399 = vmatprep.subr.bf16.mxu0 %v398_v21 }
  0x34   :  { %p492_p6 = pnand %p491_p5, %p485_p2 }
  0x35   :  { %413 = vmatpush3.bf16.msra.mxu1 %v410_v20 }
  0x36   :  { %401 = vmatpush3.bf16.msra.mxu0 %v398_v21  ;;  %415 = vmatprep.subr.bf16.mxu1 %v414_v24 }
  0x39   :  { %357 = vmatmul.mubr.msk.f32.vlgmr.msra.gmra.mrb[0].mxu0 %vm74_vm0, %v58_v27  ;;  %417 = vmatpush3.bf16.msra.mxu1 %v414_v24 }
  0x3a   :  { %419 = vmatprep.subr.bf16.mxu1 %v418_v28 }
  0x3d   :  { %421 = vmatpush3.bf16.msra.mxu1 %v418_v28 }
  0x3e   :  { %423 = vmatprep.subr.bf16.mxu1 %v422_v31 }
  0x41   :  { %425 = vmatpush3.bf16.msra.mxu1 %v422_v31 }
 0x10c   :  { %v358_v33 = vpop.f32.mrb[0].mxu0 }
 0x10d   :  { %v153_v34 = vadd.f32 %v358_v33, %v308_v32  ;;  %v147_v35 = vpop.f32.mrb[1].mxu0 }
 0x10e   :  { %v148_v36 = vadd.f32 %v308_v32, %v147_v35 }
 0x10f   :  { %158 = vst.msk [vmem:[#allocation7 + $0x8] sm:$0xff] %vm156_vm1, %v153_v34 }
 0x110   :  { %383 = vmatprep.mubr.msk.f32.mxu1 %vm156_vm1, %v148_v36  ;;  %157 = vst.msk [vmem:[#allocation7] sm:$0xff] %vm156_vm1, %v148_v36 }
 0x111   :  { %384 = vmatmul.mubr.msk.f32.vlgmr.msra.gmra.mrb[0].mxu1 %vm156_vm1, %v153_v34 }
 0x112   :  { %495 = shalt.err (!%p492_p6)
}
 0x113   :  { %s496_s30 = scalar_lea.hbm %s623_s6, 256 }
 0x114   :  { %p497_p7 = scmp.ne.s32.totalorder %s623_s6, %s496_s30  ;;  %p500_p8 = scmp.lt.u32.totalorder %s496_s30, %s623_s6 }
 0x116   :  { %p502_p9 = pnand %p500_p8, %p497_p7 }
 0x118   :  { %505 = shalt.err (!%p502_p9)
}
 0x119   :  { %299 = dma.vmem_to_hbm [thread:$0]  %s294_s27, 256, %s623_s6, [#allocation4], %s513_s7, %s513_s7, %s514_s8  }
 0x11a   :  { %v313_v38 = vld [vmem:[%s621_s4] ss:$0 sm:$0xff] }
 0x1e4   :  { %v385_v37 = vpop.f32.mrb[0].mxu1 }
 0x1e5   :  { %v245_v39 = vpop.f32.mrb[1].mxu1  ;;  %v271_v40 = vadd.f32 %v385_v37, %v313_v38 }
 0x1e6   :  { %v270_v41 = vadd.f32 %v313_v38, %v245_v39 }
 0x1e7   :  { %v315_v42 = vmul.f32 -1.442695, %v271_v40 }
 0x1e8   :  { %v314_v43 = vmul.f32 -1.442695, %v270_v41 }
 0x1e9   :  { %432 = vpow2.f32 %v315_v42 }
 0x1ea   :  { %434 = vpow2.f32 %v314_v43 }
 0x1f3   :  { %v433_v44 = vpop.eup %432 }
 0x1f4   :  { %v435_v45 = vpop.eup %434  ;;  %v279_v46 = vadd.f32 1.0, %v433_v44 }
 0x1f5   :  { %v278_v47 = vadd.f32 1.0, %v435_v45 }
 0x1f6   :  { %436 = vrcp.f32 %v279_v46 }
 0x1f7   :  { %438 = vrcp.f32 %v278_v47 }
 0x200   :  { %v437_v48 = vpop.eup %436 }
 0x201   :  { %v439_v49 = vpop.eup %438  ;;  %285 = vst [vmem:[%s622_s5 + $0x8] sm:$0xff] %v437_v48 }
 0x202   :  { %284 = vst [vmem:[%s622_s5] sm:$0xff] %v439_v49 }
 0x203   :  { %510 = dma.done.wait [#allocation4], 256  }
 0x204   :  { %511 = vsyncadd [#allocation4], 4294967040 }
 0x205   :  { %305 = vsyncpa [#allocation3], 1 }
 0x206   :  { %306 = vsyncpa [#allocation6], 1 }
 0x207   :  { %307 = vsyncpa [#allocation4], 1 }

</bundles_post_ra>
